<compile_context>
chip_gen: v7x
topology: tpu7x:2x2x1
jax: 0.10.0
libtpu: 0.0.40
codegen_flags: <defaults>
</compile_context>

<pallas_src>
import math

import jax
import jax.numpy as jnp
from jax.experimental import pallas as pl
from jax.experimental.pallas import tpu as pltpu

EPS = 1e-5
MOMENTUM = 0.9
_MIB = 1024 * 1024


# -----------------------------------------------------------------------------
# Chip-aware limits and tile choosers.
# -----------------------------------------------------------------------------
def _sublane_gran(dtype):
    """Sublane tiling granularity for the second-to-last block dim."""
    return {4: 8, 2: 16, 1: 32}.get(jnp.dtype(dtype).itemsize, 8)


def _tpu_limits():
    """Generation-aware scoped-VMEM limit and per-pass block budgets."""
    try:
        vmem_bytes = int(pltpu.get_tpu_info().vmem_capacity_bytes)
    except Exception:
        vmem_bytes = 0
    if vmem_bytes >= 96 * _MIB:
        # v5e / v6e class: 128 MiB physical VMEM.
        return dict(vmem_limit=96 * _MIB, norm_budget=8 * _MIB,
                    stats_budget=12 * _MIB, fused_budget=8 * _MIB)
    # v7x class (64 MiB physical) or unknown: stay conservative.
    return dict(vmem_limit=44 * _MIB, norm_budget=6 * _MIB,
                stats_budget=6 * _MIB, fused_budget=4 * _MIB)


def _divisors(n):
    out = set()
    d = 1
    while d * d <= n:
        if n % d == 0:
            out.add(d)
            out.add(n // d)
        d += 1
    return sorted(out)


def _divisor_tile(dim, unit, cap):
    """Largest divisor t of dim with t <= cap and (t % unit == 0 or t == dim).

    Falls back to the full dim (always a legal tile) when nothing fits."""
    cap = max(1, cap)
    best = None
    for t in _divisors(dim):
        if t <= cap and (t % unit == 0 or t == dim):
            if best is None or t > best:
                best = t
    return dim if best is None else best


def _choose_blocks_3d(n_dim, c_dim, hw_dim, itemsize, gran, budget):
    """Pick (n_t, c_t, hw_t) for an (N, C, HW) layout under a per-block budget.

    Legality: hw_t multiple of 128 or == HW; c_t multiple of `gran` (dtype
    aware) or == C; n_t any divisor.  The c/hw caps use f32 accounting so the
    stats pass's (c_t, hw_t) f32 scratch also stays within `budget`."""
    hw_t = _divisor_tile(hw_dim, 128, max(128, budget // (gran * 4)))
    c_t = _divisor_tile(c_dim, gran, max(gran, budget // (hw_t * 4)))
    n_cap = max(1, budget // (c_t * hw_t * itemsize))
    n_t = max(d for d in _divisors(n_dim) if d <= n_cap)
    return n_t, c_t, hw_t


# -----------------------------------------------------------------------------
# 4-D (NCHW) kernels.  x viewed as (N, C, HW): channels on sublanes, HW on lanes.
# -----------------------------------------------------------------------------
def _fused3d_kernel(x_ref, gamma_ref, beta_ref, y_ref, mean_ref, var_ref):
    """Single-pass stats + normalize for one channel tile resident in VMEM."""
    x = x_ref[...].astype(jnp.float32)                        # (N, c_t, HW)
    cnt = x.shape[0] * x.shape[2]
    mean = jnp.sum(jnp.sum(x, axis=0), axis=-1, keepdims=True) / cnt   # (c_t, 1)
    d = x - mean[None]
    var = jnp.sum(jnp.sum(d * d, axis=0), axis=-1, keepdims=True) / cnt
    inv_std = jax.lax.rsqrt(var + EPS)
    scale = gamma_ref[...] * inv_std
    shift = beta_ref[...] - mean * scale
    y_ref[...] = (x * scale[None] + shift[None]).astype(y_ref.dtype)
    mean_ref[...] = mean
    var_ref[...] = var


def _stats3d_kernel(x_ref, sum_ref, sq_ref, acc_s_ref, acc_q_ref):
    """Pass 1: per-channel sum / sum-of-squares.

    Bulk of the reduction is element-wise accumulation into f32 VMEM scratch
    (VPU slots only); exactly one lane (XLU) reduce per channel tile happens
    at the last reduction step.  Grid = (shard, C-tiles, N-tiles, HW-tiles)."""
    n_id, h_id = pl.program_id(2), pl.program_id(3)

    @pl.when(jnp.logical_and(n_id == 0, h_id == 0))
    def _init():
        acc_s_ref[...] = jnp.zeros_like(acc_s_ref)
        acc_q_ref[...] = jnp.zeros_like(acc_q_ref)

    x = x_ref[...].astype(jnp.float32)                        # (n_t, c_t, hw_t)
    acc_s_ref[...] += jnp.sum(x, axis=0)                      # VPU adds only
    acc_q_ref[...] += jnp.sum(x * x, axis=0)

    @pl.when(jnp.logical_and(n_id == pl.num_programs(2) - 1,
                             h_id == pl.num_programs(3) - 1))
    def _finalize():
        sum_ref[...] = jnp.sum(acc_s_ref[...], axis=-1, keepdims=True)[None]
        sq_ref[...] = jnp.sum(acc_q_ref[...], axis=-1, keepdims=True)[None]


def _norm3d_kernel(x_ref, scale_ref, shift_ref, y_ref):
    """Pass 2: y = x * scale[c] + shift[c] (one FMA per element)."""
    x = x_ref[...].astype(jnp.float32)
    y_ref[...] = (x * scale_ref[...] + shift_ref[...]).astype(y_ref.dtype)


def _bn_4d(x, gamma_c1, beta_c1, force_two_pass=False):
    N, C, H, W = x.shape
    HW = H * W
    x3 = x.reshape(N, C, HW)                                  # free view, no transpose
    itemsize = x.dtype.itemsize
    gran = _sublane_gran(x.dtype)
    lim = _tpu_limits()

    def cparams(sems):
        return pltpu.CompilerParams(dimension_semantics=sems,
                                    vmem_limit_bytes=lim["vmem_limit"])

    # ---- Fused single-pass path: x blocked only over C -> 2x HBM traffic ----
    per_chan = N * HW * itemsize
    if not force_two_pass and per_chan <= lim["fused_budget"]:
        c_t = _divisor_tile(C, gran, lim["fused_budget"] // per_chan)
        if c_t * per_chan <= lim["fused_budget"]:
            y3, mean, var = pl.pallas_call(
                _fused3d_kernel,
                grid=(C // c_t,),
                in_specs=[pl.BlockSpec((N, c_t, HW), lambda c: (0, c, 0)),
                          pl.BlockSpec((c_t, 1), lambda c: (c, 0)),
                          pl.BlockSpec((c_t, 1), lambda c: (c, 0))],
                out_specs=(pl.BlockSpec((N, c_t, HW), lambda c: (0, c, 0)),
                           pl.BlockSpec((c_t, 1), lambda c: (c, 0)),
                           pl.BlockSpec((c_t, 1), lambda c: (c, 0))),
                out_shape=(jax.ShapeDtypeStruct((N, C, HW), x.dtype),
                           jax.ShapeDtypeStruct((C, 1), jnp.float32),
                           jax.ShapeDtypeStruct((C, 1), jnp.float32)),
                compiler_params=cparams(("parallel",)),
            )(x3, gamma_c1, beta_c1)
            return y3.reshape(N, C, H, W), mean, var

    # ---- Two-pass path ----
    # Pass 1 (stats) only pipelines the input, so it gets a bigger block budget
    # than pass 2 (which double-buffers both the input and the output blocks).
    n_shards = 2 if (N % 2 == 0 and N >= 2) else 1            # feed both v7x TCs
    n_ps = N // n_shards
    n_t, c_t, hw_t = _choose_blocks_3d(n_ps, C, HW, itemsize, gran,
                                       lim["stats_budget"])
    npt = n_ps // n_t
    sums, sqs = pl.pallas_call(
        _stats3d_kernel,
        grid=(n_shards, C // c_t, npt, HW // hw_t),
        in_specs=[pl.BlockSpec((n_t, c_t, hw_t),
                               lambda s, c, n, h: (s * npt + n, c, h))],
        out_specs=(pl.BlockSpec((1, c_t, 1), lambda s, c, n, h: (s, c, 0)),
                   pl.BlockSpec((1, c_t, 1), lambda s, c, n, h: (s, c, 0))),
        out_shape=(jax.ShapeDtypeStruct((n_shards, C, 1), jnp.float32),
                   jax.ShapeDtypeStruct((n_shards, C, 1), jnp.float32)),
        scratch_shapes=[pltpu.VMEM((c_t, hw_t), jnp.float32),
                        pltpu.VMEM((c_t, hw_t), jnp.float32)],
        compiler_params=cparams(("parallel", "parallel", "arbitrary", "arbitrary")),
    )(x3)
    sums = jnp.sum(sums, axis=0)                              # tiny (C, 1) wrapper sum
    sqs = jnp.sum(sqs, axis=0)

    cnt = float(N * HW)
    mean = sums / cnt
    # TODO(synk): E[x^2]-E[x]^2 is cancellation-prone when |mean| >> std; a
    # shifted-sum stats pass would fix it at the cost of an extra HBM sweep.
    var = jnp.maximum(sqs / cnt - mean * mean, 0.0)
    inv_std = jax.lax.rsqrt(var + EPS)
    scale = gamma_c1 * inv_std
    shift = beta_c1 - mean * scale

    n_t2, c_t2, hw_t2 = _choose_blocks_3d(N, C, HW, itemsize, gran,
                                          lim["norm_budget"])
    x_spec = pl.BlockSpec((n_t2, c_t2, hw_t2), lambda c, n, h: (n, c, h))
    y3 = pl.pallas_call(
        _norm3d_kernel,
        grid=(C // c_t2, N // n_t2, HW // hw_t2),
        in_specs=[x_spec,
                  pl.BlockSpec((1, c_t2, 1), lambda c, n, h: (0, c, 0)),
                  pl.BlockSpec((1, c_t2, 1), lambda c, n, h: (0, c, 0))],
        out_specs=x_spec,
        out_shape=jax.ShapeDtypeStruct((N, C, HW), x.dtype),
        compiler_params=cparams(("parallel", "parallel", "parallel")),
    )(x3, scale.reshape(1, C, 1), shift.reshape(1, C, 1))
    return y3.reshape(N, C, H, W), mean, var


# -----------------------------------------------------------------------------
# 2-D (M, F) kernels: features on lanes.  When F % 128 != 0 the wrapper folds
# k rows into the lane axis ((M, F) -> (M/k, k*F)) for lane-dense stores.
# -----------------------------------------------------------------------------
def _fused2d_kernel(x_ref, gamma_ref, beta_ref, y_ref, mean_ref, var_ref):
    x = x_ref[...].astype(jnp.float32)                        # (M, F)
    m = x.shape[0]
    mean = jnp.sum(x, axis=0, keepdims=True) / m
    d = x - mean
    var = jnp.sum(d * d, axis=0, keepdims=True) / m
    inv_std = jax.lax.rsqrt(var + EPS)
    scale = gamma_ref[...] * inv_std
    shift = beta_ref[...] - mean * scale
    y_ref[...] = (x * scale + shift).astype(y_ref.dtype)
    mean_ref[...] = mean
    var_ref[...] = var


def _stats2d_kernel(x_ref, sum_ref, sq_ref):
    @pl.when(pl.program_id(1) == 0)
    def _init():
        sum_ref[...] = jnp.zeros_like(sum_ref)
        sq_ref[...] = jnp.zeros_like(sq_ref)

    x = x_ref[...].astype(jnp.float32)                        # (tm, Fk)
    sum_ref[...] += jnp.sum(x, axis=0, keepdims=True)[None]
    sq_ref[...] += jnp.sum(x * x, axis=0, keepdims=True)[None]


def _norm2d_kernel(x_ref, scale_ref, shift_ref, y_ref):
    x = x_ref[...].astype(jnp.float32)
    y_ref[...] = (x * scale_ref[...] + shift_ref[...]).astype(y_ref.dtype)


def _bn_2d(x2, gamma_1f, beta_1f, force_two_pass=False):
    M, F = x2.shape
    itemsize = x2.dtype.itemsize
    gran = _sublane_gran(x2.dtype)
    lim = _tpu_limits()

    def cparams(sems):
        return pltpu.CompilerParams(dimension_semantics=sems,
                                    vmem_limit_bytes=lim["vmem_limit"])

    # ---- Fused single-pass path (whole array resident) ----
    if not force_two_pass and M * F * itemsize <= lim["fused_budget"]:
        y, mean, var = pl.pallas_call(
            _fused2d_kernel,
            grid=(1,),
            in_specs=[pl.BlockSpec((M, F), lambda i: (0, 0)),
                      pl.BlockSpec((1, F), lambda i: (0, 0)),
                      pl.BlockSpec((1, F), lambda i: (0, 0))],
            out_specs=(pl.BlockSpec((M, F), lambda i: (0, 0)),
                       pl.BlockSpec((1, F), lambda i: (0, 0)),
                       pl.BlockSpec((1, F), lambda i: (0, 0))),
            out_shape=(jax.ShapeDtypeStruct((M, F), x2.dtype),
                       jax.ShapeDtypeStruct((1, F), jnp.float32),
                       jax.ShapeDtypeStruct((1, F), jnp.float32)),
            compiler_params=cparams(("arbitrary",)),
        )(x2, gamma_1f, beta_1f)
        return y, mean, var

    # ---- Two-pass path with lane folding ----
    k = 1
    if F % 128 != 0:
        kk = 128 // math.gcd(F, 128)
        if M % kk == 0:
            k = kk                                            # lane-dense fold
    mk, fk = M // k, k * F
    xf = x2.reshape(mk, fk)

    n_shards = 2 if (mk % 2 == 0 and (mk // 2) % gran == 0) else 1
    mk_ps = mk // n_shards
    tm = _divisor_tile(mk_ps, gran,
                       max(gran, lim["stats_budget"] // (fk * itemsize)))
    rpt = mk_ps // tm
    sums, sqs = pl.pallas_call(
        _stats2d_kernel,
        grid=(n_shards, rpt),
        in_specs=[pl.BlockSpec((tm, fk), lambda s, i: (s * rpt + i, 0))],
        out_specs=(pl.BlockSpec((1, 1, fk), lambda s, i: (s, 0, 0)),
                   pl.BlockSpec((1, 1, fk), lambda s, i: (s, 0, 0))),
        out_shape=(jax.ShapeDtypeStruct((n_shards, 1, fk), jnp.float32),
                   jax.ShapeDtypeStruct((n_shards, 1, fk), jnp.float32)),
        compiler_params=cparams(("parallel", "arbitrary")),
    )(xf)
    s = jnp.sum(sums, axis=0).reshape(k, F).sum(axis=0).reshape(1, F)
    q = jnp.sum(sqs, axis=0).reshape(k, F).sum(axis=0).reshape(1, F)

    mean = s / float(M)
    var = jnp.maximum(q / float(M) - mean * mean, 0.0)
    inv_std = jax.lax.rsqrt(var + EPS)
    scale = gamma_1f * inv_std
    shift = beta_1f - mean * scale

    tm2 = _divisor_tile(mk, gran,
                        max(gran, lim["norm_budget"] // (fk * itemsize)))
    y = pl.pallas_call(
        _norm2d_kernel,
        grid=(mk // tm2,),
        in_specs=[pl.BlockSpec((tm2, fk), lambda i: (i, 0)),
                  pl.BlockSpec((1, fk), lambda i: (0, 0)),
                  pl.BlockSpec((1, fk), lambda i: (0, 0))],
        out_specs=pl.BlockSpec((tm2, fk), lambda i: (i, 0)),
        out_shape=jax.ShapeDtypeStruct((mk, fk), x2.dtype),
        compiler_params=cparams(("parallel",)),
    )(xf, jnp.tile(scale, (1, k)), jnp.tile(shift, (1, k)))
    return y.reshape(M, F), mean, var


# -----------------------------------------------------------------------------
# Public forward (training-mode), matching the PyTorch module semantics.
# -----------------------------------------------------------------------------
def batch_norm_forward(x, gamma, beta, moving_mean, moving_var, *,
                       force_two_pass=False):
    """Returns (Y, new_moving_mean, new_moving_var), shapes matching inputs.

    `force_two_pass=True` skips the fused small-input path (used by the tests
    to exercise the tiled stats + normalize kernels)."""
    if x.ndim == 4:
        C = x.shape[1]
        y, mean, var = _bn_4d(x, gamma.astype(jnp.float32).reshape(C, 1),
                              beta.astype(jnp.float32).reshape(C, 1),
                              force_two_pass)
    elif x.ndim == 2:
        F = x.shape[1]
        y, mean, var = _bn_2d(x, gamma.astype(jnp.float32).reshape(1, F),
                              beta.astype(jnp.float32).reshape(1, F),
                              force_two_pass)
    else:
        raise ValueError("x must be rank 2 or rank 4")
    new_mm = (MOMENTUM * moving_mean.astype(jnp.float32)
              + (1.0 - MOMENTUM) * mean.reshape(moving_mean.shape))
    new_mv = (MOMENTUM * moving_var.astype(jnp.float32)
              + (1.0 - MOMENTUM) * var.reshape(moving_var.shape))
    return y, new_mm.astype(moving_mean.dtype), new_mv.astype(moving_var.dtype)


def _reference(x, gamma, beta, moving_mean, moving_var):
    """Pure-JAX reference matching the PyTorch batch_norm (training branch)."""
    if x.ndim == 2:
        mean = jnp.mean(x, axis=0)
        var = jnp.mean((x - mean) ** 2, axis=0)
    else:
        mean = jnp.mean(x, axis=(0, 2, 3), keepdims=True)
        var = jnp.mean((x - mean) ** 2, axis=(0, 2, 3), keepdims=True)
    x_hat = (x - mean) / jnp.sqrt(var + EPS)
    y = gamma * x_hat + beta
    new_mm = MOMENTUM * moving_mean + (1.0 - MOMENTUM) * mean
    new_mv = MOMENTUM * moving_var + (1.0 - MOMENTUM) * var
    return y, new_mm, new_mv


if __name__ == "__main__":
    keys = jax.random.split(jax.random.PRNGKey(0), 4)

    def run_case(key, x_shape, param_shape, force_two_pass):
        kx, kg, kb, km, kv = jax.random.split(key, 5)
        x = jax.random.normal(kx, x_shape, jnp.float32)
        gamma = 1.0 + 0.1 * jax.random.normal(kg, param_shape, jnp.float32)
        beta = 0.1 * jax.random.normal(kb, param_shape, jnp.float32)
        mm = 0.05 * jax.random.normal(km, param_shape, jnp.float32)
        mv = 1.0 + 0.1 * jax.random.normal(kv, param_shape, jnp.float32)

        out = batch_norm_forward(x, gamma, beta, mm, mv,
                                 force_two_pass=force_two_pass)
        jax.block_until_ready(out)
        ref = _reference(x, gamma, beta, mm, mv)
        for name, got, want, atol in (("Y", out[0], ref[0], 1e-4),
                                      ("moving_mean", out[1], ref[1], 1e-5),
                                      ("moving_var", out[2], ref[2], 1e-5)):
            err = float(jnp.max(jnp.abs(got - want)))
            assert bool(jnp.allclose(got, want, atol=atol, rtol=1e-4)), (
                f"{name} mismatch on {x_shape} (max abs err {err:.3e})")

    # 4-D NCHW, BatchNorm(num_features=4, num_dims=4): fused single-pass path.
    run_case(keys[0], (2, 4, 16, 16), (1, 4, 1, 1), force_two_pass=False)
    # 4-D NCHW: tiled two-pass path (sharded stats pass + normalize pass).
    run_case(keys[1], (4, 16, 16, 16), (1, 16, 1, 1), force_two_pass=True)
    # 2-D, BatchNorm(num_features=32, num_dims=2): fused single-pass path.
    run_case(keys[2], (16, 32), (1, 32), force_two_pass=False)
    # 2-D: tiled two-pass path with lane folding ((64, 32) -> (16, 128)).
    run_case(keys[3], (64, 32), (1, 32), force_two_pass=True)

    print("KERNEL_OK")
</pallas_src>

<mosaic_0001>
module attributes {stable_mosaic.version = 11 : i64} {
  func.func @_fused3d_kernel(%arg0: i32, %arg1: memref<2x4x256xf32, #tpu.memory_space<vmem>>, %arg2: memref<4x1xf32, #tpu.memory_space<vmem>>, %arg3: memref<4x1xf32, #tpu.memory_space<vmem>>, %arg4: memref<2x4x256xf32, #tpu.memory_space<vmem>>, %arg5: memref<4x1xf32, #tpu.memory_space<vmem>>, %arg6: memref<4x1xf32, #tpu.memory_space<vmem>>) attributes {dimension_semantics = [#tpu.dimension_semantics<parallel>], iteration_bounds = array<i64: 1>, scalar_prefetch = 0 : i64, scratch_operands = 0 : i64, tpu.core_type = #tpu.core_type<tc>, window_params = [{transform_indices = @transform_0, window_bounds = array<i64: 2, 4, 256>}, {transform_indices = @transform_1, window_bounds = array<i64: 4, 1>}, {transform_indices = @transform_2, window_bounds = array<i64: 4, 1>}, {transform_indices = @transform_3, window_bounds = array<i64: 2, 4, 256>}, {transform_indices = @transform_4, window_bounds = array<i64: 4, 1>}, {transform_indices = @transform_5, window_bounds = array<i64: 4, 1>}]} {
    %c0 = arith.constant 0 : index
    %c0_0 = arith.constant 0 : index
    %c0_1 = arith.constant 0 : index
    %0 = vector.load %arg1[%c0, %c0_0, %c0_1] : memref<2x4x256xf32, #tpu.memory_space<vmem>>, vector<2x4x256xf32>
    %cst = arith.constant dense<0.000000e+00> : vector<4x256xf32>
    %1 = vector.multi_reduction <add>, %0, %cst [0] : vector<2x4x256xf32> to vector<4x256xf32>
    %cst_2 = arith.constant dense<0.000000e+00> : vector<4xf32>
    %2 = vector.multi_reduction <add>, %1, %cst_2 [1] : vector<4x256xf32> to vector<4xf32>
    %3 = vector.shape_cast %2 : vector<4xf32> to vector<4x1xf32>
    %cst_3 = arith.constant 5.120000e+02 : f32
    %4 = vector.broadcast %cst_3 : f32 to vector<4x1xf32>
    %5 = arith.divf %3, %4 : vector<4x1xf32>
    %6 = vector.shape_cast %5 : vector<4x1xf32> to vector<1x4x1xf32>
    %7 = vector.broadcast %6 : vector<1x4x1xf32> to vector<2x4x256xf32>
    %8 = arith.subf %0, %7 : vector<2x4x256xf32>
    %9 = arith.mulf %8, %8 : vector<2x4x256xf32>
    %cst_4 = arith.constant dense<0.000000e+00> : vector<4x256xf32>
    %10 = vector.multi_reduction <add>, %9, %cst_4 [0] : vector<2x4x256xf32> to vector<4x256xf32>
    %cst_5 = arith.constant dense<0.000000e+00> : vector<4xf32>
    %11 = vector.multi_reduction <add>, %10, %cst_5 [1] : vector<4x256xf32> to vector<4xf32>
    %12 = vector.shape_cast %11 : vector<4xf32> to vector<4x1xf32>
    %cst_6 = arith.constant 5.120000e+02 : f32
    %13 = vector.broadcast %cst_6 : f32 to vector<4x1xf32>
    %14 = arith.divf %12, %13 : vector<4x1xf32>
    %cst_7 = arith.constant 9.99999974E-6 : f32
    %15 = vector.broadcast %cst_7 : f32 to vector<4x1xf32>
    %16 = arith.addf %14, %15 : vector<4x1xf32>
    %17 = math.rsqrt %16 : vector<4x1xf32>
    %c0_8 = arith.constant 0 : index
    %c0_9 = arith.constant 0 : index
    %18 = vector.load %arg2[%c0_8, %c0_9] : memref<4x1xf32, #tpu.memory_space<vmem>>, vector<4x1xf32>
    %19 = arith.mulf %18, %17 : vector<4x1xf32>
    %c0_10 = arith.constant 0 : index
    %c0_11 = arith.constant 0 : index
    %20 = vector.load %arg3[%c0_10, %c0_11] : memref<4x1xf32, #tpu.memory_space<vmem>>, vector<4x1xf32>
    %21 = arith.mulf %5, %19 : vector<4x1xf32>
    %22 = arith.subf %20, %21 : vector<4x1xf32>
    %23 = vector.shape_cast %19 : vector<4x1xf32> to vector<1x4x1xf32>
    %24 = vector.broadcast %23 : vector<1x4x1xf32> to vector<2x4x256xf32>
    %25 = arith.mulf %0, %24 : vector<2x4x256xf32>
    %26 = vector.shape_cast %22 : vector<4x1xf32> to vector<1x4x1xf32>
    %27 = vector.broadcast %26 : vector<1x4x1xf32> to vector<2x4x256xf32>
    %28 = arith.addf %25, %27 : vector<2x4x256xf32>
    %c0_12 = arith.constant 0 : index
    %c0_13 = arith.constant 0 : index
    %c0_14 = arith.constant 0 : index
    %29 = vector.load %arg4[%c0_12, %c0_13, %c0_14] : memref<2x4x256xf32, #tpu.memory_space<vmem>>, vector<2x4x256xf32>
    tpu.vector_store %arg4[%c0_12, %c0_13, %c0_14], %28 {strides = array<i32>} : memref<2x4x256xf32, #tpu.memory_space<vmem>>, vector<2x4x256xf32>,
    %c0_15 = arith.constant 0 : index
    %c0_16 = arith.constant 0 : index
    %30 = vector.load %arg5[%c0_15, %c0_16] : memref<4x1xf32, #tpu.memory_space<vmem>>, vector<4x1xf32>
    tpu.vector_store %arg5[%c0_15, %c0_16], %5 {strides = array<i32>} : memref<4x1xf32, #tpu.memory_space<vmem>>, vector<4x1xf32>,
    %c0_17 = arith.constant 0 : index
    %c0_18 = arith.constant 0 : index
    %31 = vector.load %arg6[%c0_17, %c0_18] : memref<4x1xf32, #tpu.memory_space<vmem>>, vector<4x1xf32>
    tpu.vector_store %arg6[%c0_17, %c0_18], %14 {strides = array<i32>} : memref<4x1xf32, #tpu.memory_space<vmem>>, vector<4x1xf32>,
    return
  }
  func.func @transform_0(%arg0: i32) -> (i32, i32, i32) {
    %c0_i32 = arith.constant 0 : i32
    %c0_i32_0 = arith.constant 0 : i32
    %c0_i32_1 = arith.constant 0 : i32
    return %c0_i32, %arg0, %c0_i32_0 : i32, i32, i32
  }
  func.func @transform_1(%arg0: i32) -> (i32, i32) {
    %c0_i32 = arith.constant 0 : i32
    %c0_i32_0 = arith.constant 0 : i32
    return %arg0, %c0_i32 : i32, i32
  }
  func.func @transform_2(%arg0: i32) -> (i32, i32) {
    %c0_i32 = arith.constant 0 : i32
    %c0_i32_0 = arith.constant 0 : i32
    return %arg0, %c0_i32 : i32, i32
  }
  func.func @transform_3(%arg0: i32) -> (i32, i32, i32) {
    %c0_i32 = arith.constant 0 : i32
    %c0_i32_0 = arith.constant 0 : i32
    %c0_i32_1 = arith.constant 0 : i32
    return %c0_i32, %arg0, %c0_i32_0 : i32, i32, i32
  }
  func.func @transform_4(%arg0: i32) -> (i32, i32) {
    %c0_i32 = arith.constant 0 : i32
    %c0_i32_0 = arith.constant 0 : i32
    return %arg0, %c0_i32 : i32, i32
  }
  func.func @transform_5(%arg0: i32) -> (i32, i32) {
    %c0_i32 = arith.constant 0 : i32
    %c0_i32_0 = arith.constant 0 : i32
    return %arg0, %c0_i32 : i32, i32
  }
}

</mosaic_0001>

<bundles_post_ra>
// kernel: tpu_custom_call.1
= control target key start
LH: loop header
LB: loop body
LE: loop exit
PB: predicated region body
PF: predicated region fallthrough
CT: control target
= control target key end

     0   :  { %11 = vsyncpa [#allocation3], 0  ;;  %s302_s0 = inlined_call_operand.hbm [shape: f32[2,4,256], index: 0, kind: input, shape index: {}]   ;;  %s303_s1 = inlined_call_operand.vmem [shape: f32[4,1], index: 1, kind: input, shape index: {}]   ;;  %s304_s2 = inlined_call_operand.vmem [shape: f32[4,1], index: 2, kind: input, shape index: {}]   ;;  %s305_s3 = inlined_call_operand.hbm [shape: f32[2,4,256], index: 3, kind: output, shape index: {0}]   ;;  %s306_s4 = inlined_call_operand.vmem [shape: f32[4,1], index: 4, kind: output, shape index: {1}]   ;;  %s307_s5 = inlined_call_operand.vmem [shape: f32[4,1], index: 5, kind: output, shape index: {2}]  }
   0x1   :  { %12 = vsyncpa [#allocation4], 0  ;;  %s210_s18 = smov [#allocation2]   ;;  %s162_s22 = scalar_lea.hbm %s302_s0, 256 }
   0x2   :  { %s18_s19 = sshll.u32 %s210_s18, 4  ;;  %p163_p0 = scmp.ne.s32.totalorder %s302_s0, %s162_s22  ;;  %s19_s19 = int_to_ptr.vmem [resolvable:$true] %s18_s19 }
   0x3   :  { %p166_p1 = scmp.lt.u32.totalorder %s162_s22, %s302_s0 }
   0x5   :  { %p168_p2 = pnand %p166_p1, %p163_p0 }
   0x7   :  { %171 = shalt.err (!%p168_p2)
}
   0x8   :  { %s172_s27 = scalar_lea.vmem %s19_s19, 256  ;;  %p177_p4 = scmp.lt.s32.totalorder %s19_s19, %s19_s19 }
   0x9   :  { %p173_p3 = scmp.ne.s32.totalorder %s19_s19, %s172_s27  ;;  %p178_p5 = scmp.lt.s32.totalorder %s172_s27, %s172_s27 }
   0xb   :  { %p179_p6 = por %p178_p5, %p177_p4 }
   0xd   :  { %p180_p7 = pnand %p179_p6, %p173_p3 }
   0xf   :  { %183 = shalt.err (!%p180_p7)
}
  0x10   :  { %s211_s28 = smov 128   ;;  %s212_s29 = smov 8  }
  0x11   :  { %24 = dma.hbm_to_vmem [thread:$0]  %s302_s0, 256, %s19_s19, [#allocation3], %s211_s28, %s211_s28, %s212_s29  }
  0x12   :  { %206 = dma.done.wait [#allocation3], 256  }
  0x13   :  { %207 = vsyncadd [#allocation3], 4294967040  ;;  %vm40_vm0 = vcmask 1043456   ;;  %v32_v0 = vld [vmem:[#allocation2] sm:$0xff]  ;;  %v33_v1 = vld [vmem:[#allocation2 + $0x8] sm:$0xff]  ;;  %v58_v15 = vlaneseq  ;;  %vm122_vm1 = vcmask 3072  }
  0x14   :  { %v36_v2 = vcombine.high %v32_v0, %v32_v0  ;;  %v37_v3 = vcombine.high %v33_v1, %v33_v1  ;;  %v41_v4 = vsel %vm40_vm0, %v32_v0, 0.0  ;;  %v42_v5 = vsel %vm40_vm0, %v33_v1, 0.0  ;;  %v87_v41 = vld [vmem:[%s303_s1] sm:$0xf]  ;;  %s215_s13 = smov [#allocation5]  }
  0x15   :  { %v43_v6 = vadd.f32 %v42_v5, %v41_v4  ;;  %v213_v13 = vmov 839922192   ;;  %v59_v17 = vshrl.u32 %v58_v15, 7  ;;  %v214_v37 = vmov 0   ;;  %v89_v44 = vld [vmem:[%s304_s2] sm:$0xf] }
  0x16   :  { %v44_v7 = vsel %vm40_vm0, %v36_v2, 0.0  ;;  %v45_v8 = vsel %vm40_vm0, %v37_v3, 0.0  ;;  %v56_v14 = vunpack.c.l.s4 %v213_v13  ;;  %156 = vset.pattern.permute.xlu1 %v214_v37  ;;  %157 = vset.pattern.permute.xlu0 %v214_v37 }
  0x17   :  { %v46_v9 = vadd.f32 %v45_v8, %v44_v7  ;;  %v47_v10 = vsel %vm40_vm0, %v43_v6, 0.0 }
  0x18   :  { %v57_v16 = vunpack.c.0.s8 %v56_v14 }
  0x19   :  { %v48_v11 = vsel %vm40_vm0, %v46_v9, 0.0 }
  0x1a   :  { %v49_v12 = vadd.f32 %v48_v11, %v47_v10  ;;  %v60_v18 = vsub.s32 %v57_v16, %v59_v17 }
  0x1c   :  { %50 = vadd.xlane.f32.xlu0 %v49_v12 }
  0xa9   :  { %v51_v19 = vpop.xlane.xlu0 %50 }
  0xaa   :  { %v53_v20 = vmul.f32 0.001953125, %v51_v19 }
  0xac   :  { %v61_v21 = vrot.slane %v53_v20, %v60_v18  ;;  %123 = vst.msk [vmem:[%s306_s4] sm:$0xf] %vm122_vm1, %v53_v20 }
  0xae   :  { %v63_v22 = vsub.f32 %v32_v0, %v61_v21  ;;  %v64_v23 = vsub.f32 %v33_v1, %v61_v21 }
  0xb0   :  { %v65_v24 = vmul.f32 %v63_v22, %v63_v22  ;;  %v66_v25 = vmul.f32 %v64_v23, %v64_v23 }
  0xb2   :  { %v69_v26 = vcombine.high %v65_v24, %v65_v24  ;;  %v70_v27 = vcombine.high %v66_v25, %v66_v25  ;;  %v73_v28 = vsel %vm40_vm0, %v65_v24, 0.0  ;;  %v74_v29 = vsel %vm40_vm0, %v66_v25, 0.0 }
  0xb3   :  { %v75_v30 = vadd.f32 %v74_v29, %v73_v28 }
  0xb4   :  { %v76_v31 = vsel %vm40_vm0, %v69_v26, 0.0  ;;  %v77_v32 = vsel %vm40_vm0, %v70_v27, 0.0 }
  0xb5   :  { %v78_v33 = vadd.f32 %v77_v32, %v76_v31  ;;  %v79_v34 = vsel %vm40_vm0, %v75_v30, 0.0 }
  0xb7   :  { %v80_v35 = vsel %vm40_vm0, %v78_v33, 0.0 }
  0xb8   :  { %v81_v36 = vadd.f32 %v80_v35, %v79_v34 }
  0xba   :  { %82 = vadd.xlane.f32.xlu0 %v81_v36 }
 0x147   :  { %v83_v38 = vpop.xlane.xlu0 %82 }
 0x148   :  { %v84_v39 = vmul.f32 0.001953125, %v83_v38 }
 0x14a   :  { %v85_v40 = vadd.f32 1e-05, %v84_v39  ;;  %124 = vst.msk [vmem:[%s307_s5] sm:$0xf] %vm122_vm1, %v84_v39  ;;  %s130_s5 = sshll.u32 %s215_s13, 4  ;;  %s131_s5 = int_to_ptr.vmem [resolvable:$true] %s130_s5 }
 0x14b   :  { %s184_s1 = scalar_lea.vmem %s131_s5, 256  ;;  %p189_p9 = scmp.lt.s32.totalorder %s131_s5, %s131_s5 }
 0x14c   :  { %160 = vrsqrt.f32 %v85_v40  ;;  %p185_p8 = scmp.ne.s32.totalorder %s131_s5, %s184_s1  ;;  %p190_p10 = scmp.lt.s32.totalorder %s184_s1, %s184_s1 }
 0x14e   :  { %p191_p11 = por %p190_p10, %p189_p9 }
 0x150   :  { %p192_p12 = pnand %p191_p11, %p185_p8 }
 0x156   :  { %v161_v42 = vpop.eup %160 }
 0x157   :  { %v88_v43 = vmul.f32 %v161_v42, %v87_v41 }
 0x159   :  { %94 = vperm.xlu1 %156, %v88_v43   ;;  %v90_v45 = vmul.f32 %v88_v43, %v53_v20 }
 0x15b   :  { %v91_v46 = vsub.f32 %v89_v44, %v90_v45 }
 0x15d   :  { %108 = vperm.xlu1 %156, %v91_v46  }
 0x1d8   :  { %v95_v47 = vpop.permute.xlu1 %94 }
 0x1d9   :  { %v102_v48 = vrot.slane %v95_v47, %v60_v18 }
 0x1db   :  { %v104_v50 = vmul.f32 %v102_v48, %v32_v0  ;;  %v105_v51 = vmul.f32 %v102_v48, %v33_v1 }
 0x1dc   :  { %v109_v49 = vpop.permute.xlu1 %108 }
 0x1dd   :  { %v116_v52 = vrot.slane %v109_v49, %v60_v18 }
 0x1df   :  { %v118_v53 = vadd.f32 %v116_v52, %v104_v50  ;;  %v119_v54 = vadd.f32 %v116_v52, %v105_v51 }
 0x1e1   :  { %120 = vst [vmem:[#allocation5] sm:$0xff] %v118_v53  ;;  %121 = vst [vmem:[#allocation5 + $0x8] sm:$0xff] %v119_v54 }
 0x1e2   :  { %195 = shalt.err (!%p192_p12)
}
 0x1e3   :  { %s196_s15 = scalar_lea.hbm %s305_s3, 256 }
 0x1e4   :  { %p197_p13 = scmp.ne.s32.totalorder %s305_s3, %s196_s15  ;;  %p200_p0 = scmp.lt.u32.totalorder %s196_s15, %s305_s3 }
 0x1e6   :  { %p202_p1 = pnand %p200_p0, %p197_p13 }
 0x1e8   :  { %205 = shalt.err (!%p202_p1)
}
 0x1e9   :  { %136 = dma.vmem_to_hbm [thread:$0]  %s131_s5, 256, %s305_s3, [#allocation4], %s211_s28, %s211_s28, %s212_s29  }
 0x1ea   :  { %208 = dma.done.wait [#allocation4], 256  }
 0x1eb   :  { %209 = vsyncadd [#allocation4], 4294967040 }
 0x1ec   :  { %148 = vsyncpa [#allocation3], 1 }
 0x1ed   :  { %149 = vsyncpa [#allocation4], 1 }

</bundles_post_ra>
